<compile_context>
chip_gen: v7x
topology: tpu7x:2x2x1
jax: 0.10.0
libtpu: 0.0.40
codegen_flags: <defaults>
</compile_context>

<pallas_src>
import functools

import jax
import jax.numpy as jnp
from jax.experimental import pallas as pl
from jax.experimental.pallas import tpu as pltpu


def _round_up(x: int, m: int) -> int:
    return ((x + m - 1) // m) * m


def _head_kernel(x_ref, w_ref, b_ref, o_ref):
    # x_ref: [tile_B, H] CLS embeddings (already pooled in the wrapper).
    x = x_ref[...].astype(jnp.float32)

    # L2 normalize along hidden dim: matches F.normalize(p=2, dim=1, eps=1e-12).
    ss = jnp.sum(x * x, axis=-1, keepdims=True)
    nrm = jnp.maximum(jnp.sqrt(ss), 1e-12)
    feat = x / nrm

    # Single fused, lane-padded head matmul on the MXU: [tile_B, H] @ [H, N_pad].
    out = jnp.dot(feat, w_ref[...], preferred_element_type=jnp.float32) + b_ref[...]
    o_ref[...] = out.astype(o_ref.dtype)


@functools.partial(jax.jit, static_argnames=("tile_b",))
def custom_model_forward(last_hidden_state, attention_mask, w1, b1, w2, b2,
                         tile_b: int = 512):
    """Pallas equivalent of CustomModel.forward given the backbone output.

    last_hidden_state: [B, S, H] float32 (backbone output)
    attention_mask   : [B, S]    (unused — 'cls' pooling ignores the mask)
    w1: [H, 11], b1: [1, 11], w2: [H, 39], b2: [1, 39]
    returns (class1 [B, 11], class2 [B, 39])
    """
    del attention_mask  # CLS pooling ignores the mask (as in the reference).
    B, S, H = last_hidden_state.shape
    n1 = w1.shape[1]
    n2 = w2.shape[1]

    # --- wrapper-side layout plumbing (cheap, fused by XLA) -------------------
    # Only the CLS token is needed -> slice before the kernel (S x less HBM traffic).
    cls = last_hidden_state[:, 0, :]                       # [B, H]

    # Fuse the two heads and pad the output lane dim to a multiple of 128 so the
    # kernel's store is lane-dense (unmasked vst).
    n_fused = n1 + n2
    n_pad = _round_up(n_fused, 128)
    w = jnp.concatenate([w1, w2], axis=1)                  # [H, n_fused]
    b = jnp.concatenate([b1, b2], axis=1)                  # [1, n_fused]
    w = jnp.pad(w, ((0, 0), (0, n_pad - n_fused)))         # [H, n_pad]
    b = jnp.pad(b, ((0, 0), (0, n_pad - n_fused)))         # [1, n_pad]

    # Batch tiling: pick the largest tile that still fits, pad B to a multiple.
    tb = min(tile_b, _round_up(B, 8))
    b_pad = _round_up(B, tb)
    if b_pad != B:
        cls = jnp.pad(cls, ((0, b_pad - B), (0, 0)))
    grid = (b_pad // tb,)

    out = pl.pallas_call(
        _head_kernel,
        out_shape=jax.ShapeDtypeStruct((b_pad, n_pad), jnp.float32),
        grid=grid,
        in_specs=[
            pl.BlockSpec((tb, H), lambda i: (i, 0)),       # CLS embeddings, tiled over B
            pl.BlockSpec((H, n_pad), lambda i: (0, 0)),    # fused weights (VMEM-resident)
            pl.BlockSpec((1, n_pad), lambda i: (0, 0)),    # fused bias    (VMEM-resident)
        ],
        out_specs=pl.BlockSpec((tb, n_pad), lambda i: (i, 0)),
        compiler_params=pltpu.CompilerParams(
            dimension_semantics=("parallel",),
        ),
    )(cls, w, b)

    # Strip batch padding and split the fused/padded output back into the two heads.
    class1 = out[:B, :n1]
    class2 = out[:B, n1:n1 + n2]
    return class1, class2


if __name__ == "__main__":
    key = jax.random.PRNGKey(0)
    k_h, k_w1, k_b1, k_w2, k_b2 = jax.random.split(key, 5)

    # Small shapes consistent with the module: batch=2, seq=8, hidden=32.
    B, S, H = 2, 8, 32
    N1, N2 = 11, 39

    last_hidden_state = jax.random.normal(k_h, (B, S, H), dtype=jnp.float32)
    attention_mask = jnp.ones((B, S), dtype=jnp.int32)

    # Synthetic head parameters (PyTorch Linear stores [out, in]; we keep [H, out]
    # so the kernel computes feat @ W directly).
    w1 = jax.random.normal(k_w1, (H, N1), dtype=jnp.float32) * 0.02
    b1 = jax.random.normal(k_b1, (1, N1), dtype=jnp.float32) * 0.02
    w2 = jax.random.normal(k_w2, (H, N2), dtype=jnp.float32) * 0.02
    b2 = jax.random.normal(k_b2, (1, N2), dtype=jnp.float32) * 0.02

    class1, class2 = custom_model_forward(
        last_hidden_state, attention_mask, w1, b1, w2, b2
    )
    jax.block_until_ready((class1, class2))

    # Reference check in plain JAX.
    feat_ref = last_hidden_state[:, 0, :]
    feat_ref = feat_ref / jnp.maximum(
        jnp.sqrt(jnp.sum(feat_ref * feat_ref, axis=-1, keepdims=True)), 1e-12
    )
    c1_ref = feat_ref @ w1 + b1
    c2_ref = feat_ref @ w2 + b2
    assert class1.shape == (B, N1) and class2.shape == (B, N2)
    assert jnp.allclose(class1, c1_ref, atol=1e-5), "class1 mismatch"
    assert jnp.allclose(class2, c2_ref, atol=1e-5), "class2 mismatch"

    print("KERNEL_OK")
</pallas_src>

<mosaic_0001>
module attributes {stable_mosaic.version = 11 : i64} {
  func.func @_head_kernel(%arg0: i32, %arg1: memref<8x32xf32, #tpu.memory_space<vmem>>, %arg2: memref<32x128xf32, #tpu.memory_space<vmem>>, %arg3: memref<1x128xf32, #tpu.memory_space<vmem>>, %arg4: memref<8x128xf32, #tpu.memory_space<vmem>>) attributes {dimension_semantics = [#tpu.dimension_semantics<parallel>], iteration_bounds = array<i64: 1>, scalar_prefetch = 0 : i64, scratch_operands = 0 : i64, tpu.core_type = #tpu.core_type<tc>, window_params = [{transform_indices = @transform_0, window_bounds = array<i64: 8, 32>}, {pipeline_mode = #tpu.pipeline_mode<synchronous>, transform_indices = @transform_1, window_bounds = array<i64: 32, 128>}, {pipeline_mode = #tpu.pipeline_mode<synchronous>, transform_indices = @transform_2, window_bounds = array<i64: 1, 128>}, {transform_indices = @transform_3, window_bounds = array<i64: 8, 128>}]} {
    %c0 = arith.constant 0 : index
    %c0_0 = arith.constant 0 : index
    %0 = vector.load %arg1[%c0, %c0_0] : memref<8x32xf32, #tpu.memory_space<vmem>>, vector<8x32xf32>
    %1 = arith.mulf %0, %0 : vector<8x32xf32>
    %cst = arith.constant dense<0.000000e+00> : vector<8xf32>
    %2 = vector.multi_reduction <add>, %1, %cst [1] : vector<8x32xf32> to vector<8xf32>
    %3 = vector.shape_cast %2 : vector<8xf32> to vector<8x1xf32>
    %4 = math.sqrt %3 : vector<8x1xf32>
    %cst_1 = arith.constant 9.99999996E-13 : f32
    %5 = vector.broadcast %cst_1 : f32 to vector<8x1xf32>
    %6 = arith.maximumf %4, %5 : vector<8x1xf32>
    %7 = vector.broadcast %6 : vector<8x1xf32> to vector<8x32xf32>
    %8 = arith.divf %0, %7 : vector<8x32xf32>
    %c0_2 = arith.constant 0 : index
    %c0_3 = arith.constant 0 : index
    %9 = vector.load %arg2[%c0_2, %c0_3] : memref<32x128xf32, #tpu.memory_space<vmem>>, vector<32x128xf32>
    %cst_4 = arith.constant dense<0.000000e+00> : vector<8x128xf32>
    %10 = tpu.matmul %8, %9, %cst_4 {dimension_numbers = #tpu.dot_dimension_numbers<[1], [0], [0], [1], [0, 0, 1, 1], [], []>} : vector<8x32xf32>, vector<32x128xf32>, vector<8x128xf32> -> vector<8x128xf32>
    %c0_5 = arith.constant 0 : index
    %c0_6 = arith.constant 0 : index
    %11 = vector.load %arg3[%c0_5, %c0_6] : memref<1x128xf32, #tpu.memory_space<vmem>>, vector<1x128xf32>
    %12 = vector.broadcast %11 : vector<1x128xf32> to vector<8x128xf32>
    %13 = arith.addf %10, %12 : vector<8x128xf32>
    %c0_7 = arith.constant 0 : index
    %c0_8 = arith.constant 0 : index
    %14 = vector.load %arg4[%c0_7, %c0_8] : memref<8x128xf32, #tpu.memory_space<vmem>>, vector<8x128xf32>
    tpu.vector_store %arg4[%c0_7, %c0_8], %13 {strides = array<i32>} : memref<8x128xf32, #tpu.memory_space<vmem>>, vector<8x128xf32>,
    return
  }
  func.func @transform_0(%arg0: i32) -> (i32, i32) {
    %c0_i32 = arith.constant 0 : i32
    %c0_i32_0 = arith.constant 0 : i32
    return %arg0, %c0_i32 : i32, i32
  }
  func.func @transform_1(%arg0: i32) -> (i32, i32) {
    %c0_i32 = arith.constant 0 : i32
    %c0_i32_0 = arith.constant 0 : i32
    %c0_i32_1 = arith.constant 0 : i32
    return %c0_i32, %c0_i32_0 : i32, i32
  }
  func.func @transform_2(%arg0: i32) -> (i32, i32) {
    %c0_i32 = arith.constant 0 : i32
    %c0_i32_0 = arith.constant 0 : i32
    %c0_i32_1 = arith.constant 0 : i32
    return %c0_i32, %c0_i32_0 : i32, i32
  }
  func.func @transform_3(%arg0: i32) -> (i32, i32) {
    %c0_i32 = arith.constant 0 : i32
    %c0_i32_0 = arith.constant 0 : i32
    return %arg0, %c0_i32 : i32, i32
  }
}

</mosaic_0001>

<bundles_post_ra>
// kernel: custom_model_forward.1
= control target key start
LH: loop header
LB: loop body
LE: loop exit
PB: predicated region body
PF: predicated region fallthrough
CT: control target
= control target key end

     0   :  { %vm16_vm0 = vcmask 261120   ;;  %v150_v3 = vmov 0.0|0.0   ;;  %vm151_vm1 = vmmov 0   ;;  %v152_v7 = vmov 0.0   ;;  %s196_s0 = inlined_call_operand.vmem [shape: f32[8,32], index: 0, kind: input, shape index: {}]   ;;  %s197_s1 = inlined_call_operand.vmem [shape: f32[32,128], index: 1, kind: input, shape index: {}]   ;;  %s198_s2 = inlined_call_operand.vmem [shape: f32[1,128], index: 2, kind: input, shape index: {}]   ;;  %s199_s3 = inlined_call_operand.vmem [shape: f32[8,128], index: 3, kind: output, shape index: {}]  }
   0x1   :  { %v14_v0 = vld [vmem:[%s196_s0] sm:$0xff]  ;;  %137 = vmatprep.subr.bf16.mxu0 %v150_v3  ;;  %v31_v5 = vld [vmem:[%s197_s1 + $0x8] sm:$0xff]  ;;  %v32_v6 = vld [vmem:[%s197_s1 + $0x10] sm:$0xff]  ;;  %134 = vmatprep.mubr.msk.f32.mxu0 %vm151_vm1, %v152_v7 }
   0x2   :  { %v15_v1 = vmul.f32 %v14_v0, %v14_v0  ;;  %v30_v4 = vld [vmem:[%s197_s1] sm:$0xff]  ;;  %v33_v9 = vld [vmem:[%s197_s1 + $0x18] sm:$0xff] }
   0x3   :  { %v138_v8 = vpack.c.bf16 %v31_v5, %v30_v4  ;;  %v141_v10 = vpack.c.bf16 %v33_v9, %v32_v6  ;;  %v119_v20 = vld [vmem:[%s198_s2] ss:$0 sm:$0xff] }
   0x4   :  { %v17_v2 = vsel %vm16_vm0, %v15_v1, 0.0 }
   0x5   :  { %18 = vadd.xlane.f32.xlu0 %v17_v2  ;;  %139 = vmatpush3.bf16.msra.mxu0 %v138_v8 }
   0x6   :  { %140 = vmatprep.subr.bf16.mxu0 %v150_v3 }
   0x9   :  { %142 = vmatpush3.bf16.msra.mxu0 %v141_v10 }
  0x92   :  { %v19_v11 = vpop.xlane.xlu0 %18 }
  0x93   :  { %146 = vrsqrt.f32 %v19_v11  ;;  %vm22_vm2 = vcmp.eq.f32.partialorder %v19_v11, inf  ;;  %v25_v14 = vand.u32 2147483648, %v19_v11  ;;  %vm24_vm3 = vcmp.eq.f32.partialorder %v19_v11, 0.0 }
  0x9d   :  { %v147_v12 = vpop.eup %146 }
  0x9e   :  { %v21_v13 = vmul.f32 %v147_v12, %v19_v11 }
  0xa0   :  { %v23_v15 = vsel %vm22_vm2, %v19_v11, %v21_v13 }
  0xa1   :  { %v26_v16 = vsel %vm24_vm3, %v25_v14, %v23_v15 }
  0xa2   :  { %v27_v17 = vmax.f32 %v26_v16, 1e-12 }
  0xa4   :  { %148 = vrcp.f32 %v27_v17 }
  0xae   :  { %v149_v18 = vpop.eup %148 }
  0xaf   :  { %v29_v19 = vmul.f32 %v149_v18, %v14_v0 }
  0xb1   :  { %135 = vmatmul.mubr.msk.f32.vlgmr.msra.gmra.mrb[0].mxu0 %vm16_vm0, %v29_v19 }
 0x184   :  { %v110_v21 = vpop.f32.mrb[0].mxu0 }
 0x185   :  { %v111_v22 = vadd.f32 %v119_v20, %v110_v21  ;;  %v136_v23 = vpop.f32.mrb[1].mxu0 }
 0x187   :  { %114 = vst [vmem:[%s199_s3] sm:$0xff] %v111_v22 }

</bundles_post_ra>
